<compile_context>
chip_gen: v7x
topology: tpu7x:2x2x1
jax: 0.10.0
libtpu: 0.0.40
codegen_flags: <defaults>
</compile_context>

<pallas_src>
import jax
import jax.numpy as jnp
from jax.experimental import pallas as pl
from jax.experimental.pallas import tpu as pltpu


# ---------------------------------------------------------------------------
# Mask generation (straight port of the PyTorch helper, pure Python glue)
# ---------------------------------------------------------------------------
def generate_masks(n_features, n_fns, n_repeat):
    masks = [[] for _ in range(n_fns)]
    mask_idx = 0
    repeat_ctr = 0
    for i in range(n_features):
        nr = n_repeat[mask_idx]
        if repeat_ctr >= nr:
            mask_idx = (mask_idx + 1) % len(n_repeat)
            repeat_ctr = 0
        masks[mask_idx].append(i)
        repeat_ctr += 1
    return masks


# ---------------------------------------------------------------------------
# In-kernel activation implementations (f32 compute)
# ---------------------------------------------------------------------------
_ACT_IMPLS = {
    "relu": lambda x: jnp.maximum(x, 0.0),
    # EUP exp + EUP approx reciprocal; avoids the multi-op f32 divide on the VALU.
    "sigmoid": lambda x: pl.reciprocal(1.0 + jnp.exp(-x), approx=True),
    "torch.tanh": jnp.tanh,
}
# TODO(synk): PTanh / Renlu / Swish (parametric) and the spatial=True 'tile'
# variant are not defined in the reference module; only the non-spatial
# relu / sigmoid / tanh path is kernelized.


def _make_kernel(act_fn_names):
    def kernel(fn_ref, x_ref, o_ref):
        # fn_ref : (tile_rows, 1) int32 activation id per row
        # x_ref / o_ref : (tile_rows, tile_cols) tile of the (N*C, H*W) view
        fn = fn_ref[...]
        xf = x_ref[...].astype(jnp.float32)
        out = _ACT_IMPLS[act_fn_names[0]](xf)
        for idx in range(1, len(act_fn_names)):
            out = jnp.where(fn == idx, _ACT_IMPLS[act_fn_names[idx]](xf), out)
        o_ref[...] = out.astype(o_ref.dtype)

    return kernel


def _pick_tile(dim, unit, cap):
    """Largest block size <= cap that is a multiple of `unit` and divides `dim`.
    Falls back to the full extent (always a legal block size)."""
    if dim <= cap:
        return dim
    t = (cap // unit) * unit
    while t >= unit:
        if dim % t == 0:
            return t
        t -= unit
    return dim


# ---------------------------------------------------------------------------
# Wrapper
# ---------------------------------------------------------------------------
def mixed_activation_forward(x, fn_id_per_channel, act_fn_names,
                             *, max_tile_rows=256, max_tile_cols=2048):
    """Apply per-channel mixed activations to an NCHW tensor (spatial=False)."""
    N, C, H, W = x.shape
    NC, HW = N * C, H * W

    # (N*C, H*W) view: rows = flattened (batch, channel), lane axis = spatial.
    x2 = x.reshape(NC, HW)
    fn_id = jnp.asarray(fn_id_per_channel, jnp.int32)
    fn_rows = jnp.tile(fn_id, (N,)).reshape(NC, 1)

    # Bounded 2-D tiling: ~2 MiB f32 blocks max -> ~8 MiB double-buffered
    # in+out working set, independent of problem size.
    tr = _pick_tile(NC, 8, max_tile_rows)
    tc = _pick_tile(HW, 128, max_tile_cols)
    grid = (NC // tr, HW // tc)

    out2 = pl.pallas_call(
        _make_kernel(tuple(act_fn_names)),
        out_shape=jax.ShapeDtypeStruct((NC, HW), x.dtype),
        grid_spec=pltpu.PrefetchScalarGridSpec(
            num_scalar_prefetch=0,
            grid=grid,
            in_specs=[
                # tiny per-row fn-id column, same column stripe every j step
                pl.BlockSpec((tr, 1), lambda i, j: (i, 0)),
                # input tile
                pl.BlockSpec((tr, tc), lambda i, j: (i, j)),
            ],
            out_specs=pl.BlockSpec((tr, tc), lambda i, j: (i, j)),
        ),
        compiler_params=pltpu.CompilerParams(
            dimension_semantics=("parallel", "parallel"),
            vmem_limit_bytes=32 * 1024 * 1024,
        ),
    )(fn_rows, x2)

    return out2.reshape(N, C, H, W)


# ---------------------------------------------------------------------------
# Reference (plain JAX) for sanity checks
# ---------------------------------------------------------------------------
def reference_forward(x, masks, act_fn_names):
    ref_impls = {
        "relu": lambda v: jnp.maximum(v, 0.0),
        "sigmoid": jax.nn.sigmoid,
        "torch.tanh": jnp.tanh,
    }
    out = jnp.zeros_like(x)
    for name, mask in zip(act_fn_names, masks):
        idx = jnp.array(mask)
        out = out.at[:, idx].set(ref_impls[name](x[:, idx]))
    return out


def _fn_id_from_masks(n_features, masks):
    fn_id = [0] * n_features
    for fidx, mask in enumerate(masks):
        for c in mask:
            fn_id[c] = fidx
    return fn_id


if __name__ == "__main__":
    # MixedActivationLayer(n_features=4, n_repeat=[2, 2],
    #                      act_fn_names=['relu', 'sigmoid'],
    #                      act_fn_params=[None, None], spatial=False)
    n_features = 4
    n_repeat = [2, 2]
    act_fn_names = ["relu", "sigmoid"]
    masks = generate_masks(n_features, len(act_fn_names), n_repeat)  # [[0,1],[2,3]]
    fn_id = _fn_id_from_masks(n_features, masks)

    # Primary test: NCHW, batch=2, channels=4, spatial 16x16 (single block path)
    x = jax.random.normal(jax.random.PRNGKey(0), (2, 4, 16, 16), dtype=jnp.float32)
    out = jax.block_until_ready(mixed_activation_forward(x, fn_id, act_fn_names))
    ref = reference_forward(x, masks, act_fn_names)
    assert out.shape == x.shape and out.dtype == x.dtype
    # approx reciprocal in the sigmoid -> loosen tolerance slightly vs exact ref
    assert jnp.allclose(out, ref, atol=5e-3, rtol=5e-3), \
        float(jnp.max(jnp.abs(out - ref)))

    # Second small shape that exercises a multi-step column grid (HW=4096 -> 2 tiles)
    x_big = jax.random.normal(jax.random.PRNGKey(0), (2, 4, 32, 128), dtype=jnp.float32)
    out_big = jax.block_until_ready(
        mixed_activation_forward(x_big, fn_id, act_fn_names))
    ref_big = reference_forward(x_big, masks, act_fn_names)
    assert jnp.allclose(out_big, ref_big, atol=5e-3, rtol=5e-3), \
        float(jnp.max(jnp.abs(out_big - ref_big)))

    print("KERNEL_OK")
</pallas_src>

<mosaic_0001>
module attributes {stable_mosaic.version = 11 : i64} {
  func.func @kernel(%arg0: i32, %arg1: i32, %arg2: memref<8x1xi32, #tpu.memory_space<vmem>>, %arg3: memref<8x256xf32, #tpu.memory_space<vmem>>, %arg4: memref<8x256xf32, #tpu.memory_space<vmem>>) attributes {dimension_semantics = [#tpu.dimension_semantics<parallel>, #tpu.dimension_semantics<parallel>], iteration_bounds = array<i64: 1, 1>, scalar_prefetch = 0 : i64, scratch_operands = 0 : i64, tpu.core_type = #tpu.core_type<tc>, window_params = [{transform_indices = @transform_0, window_bounds = array<i64: 8, 1>}, {transform_indices = @transform_1, window_bounds = array<i64: 8, 256>}, {transform_indices = @transform_2, window_bounds = array<i64: 8, 256>}]} {
    %c0 = arith.constant 0 : index
    %c0_0 = arith.constant 0 : index
    %0 = vector.load %arg2[%c0, %c0_0] : memref<8x1xi32, #tpu.memory_space<vmem>>, vector<8x1xi32>
    %c0_1 = arith.constant 0 : index
    %c0_2 = arith.constant 0 : index
    %1 = vector.load %arg3[%c0_1, %c0_2] : memref<8x256xf32, #tpu.memory_space<vmem>>, vector<8x256xf32>
    %cst = arith.constant 0.000000e+00 : f32
    %2 = vector.broadcast %cst : f32 to vector<8x256xf32>
    %3 = arith.maximumf %1, %2 : vector<8x256xf32>
    %c1_i32 = arith.constant 1 : i32
    %4 = vector.broadcast %c1_i32 : i32 to vector<8x1xi32>
    %5 = arith.cmpi eq, %0, %4 : vector<8x1xi32>
    %cst_3 = arith.constant 0.000000e+00 : f32
    %6 = vector.broadcast %cst_3 : f32 to vector<8x256xf32>
    %7 = arith.subf %6, %1 : vector<8x256xf32>
    %8 = math.exp %7 : vector<8x256xf32>
    %cst_4 = arith.constant 1.000000e+00 : f32
    %9 = vector.broadcast %cst_4 : f32 to vector<8x256xf32>
    %10 = arith.addf %9, %8 : vector<8x256xf32>
    %11 = tpu.reciprocal %10 {approx = true} : vector<8x256xf32> -> vector<8x256xf32>
    %12 = vector.shape_cast %5 : vector<8x1xi1> to vector<8x1xi1>
    %13 = vector.broadcast %12 : vector<8x1xi1> to vector<8x256xi1>
    %14 = arith.select %13, %11, %3 : vector<8x256xi1>, vector<8x256xf32>
    %c0_5 = arith.constant 0 : index
    %c0_6 = arith.constant 0 : index
    %15 = vector.load %arg4[%c0_5, %c0_6] : memref<8x256xf32, #tpu.memory_space<vmem>>, vector<8x256xf32>
    tpu.vector_store %arg4[%c0_5, %c0_6], %14 {strides = array<i32>} : memref<8x256xf32, #tpu.memory_space<vmem>>, vector<8x256xf32>,
    return
  }
  func.func @transform_0(%arg0: i32, %arg1: i32) -> (i32, i32) {
    %c0_i32 = arith.constant 0 : i32
    %c0_i32_0 = arith.constant 0 : i32
    return %arg0, %c0_i32 : i32, i32
  }
  func.func @transform_1(%arg0: i32, %arg1: i32) -> (i32, i32) {
    %c0_i32 = arith.constant 0 : i32
    return %arg0, %arg1 : i32, i32
  }
  func.func @transform_2(%arg0: i32, %arg1: i32) -> (i32, i32) {
    %c0_i32 = arith.constant 0 : i32
    return %arg0, %arg1 : i32, i32
  }
}

</mosaic_0001>

<bundles_post_ra>
// kernel: tpu_custom_call.1
= control target key start
LH: loop header
LB: loop body
LE: loop exit
PB: predicated region body
PF: predicated region fallthrough
CT: control target
= control target key end

     0   :  { %7 = vsyncpa [#allocation3], 0  ;;  %s169_s0 = inlined_call_operand.vmem [shape: s32[8,1], index: 0, kind: input, shape index: {}]   ;;  %s170_s1 = inlined_call_operand.hbm [shape: f32[8,256], index: 1, kind: input, shape index: {}]   ;;  %s171_s2 = inlined_call_operand.hbm [shape: f32[8,256], index: 2, kind: output, shape index: {}]  }
   0x1   :  { %8 = vsyncpa [#allocation4], 0  ;;  %s124_s9 = smov [#allocation2]   ;;  %s76_s13 = scalar_lea.hbm %s170_s1, 256 }
   0x2   :  { %s17_s10 = sshll.u32 %s124_s9, 4  ;;  %p77_p0 = scmp.ne.s32.totalorder %s170_s1, %s76_s13  ;;  %s18_s10 = int_to_ptr.vmem [resolvable:$true] %s17_s10 }
   0x3   :  { %p80_p1 = scmp.lt.u32.totalorder %s76_s13, %s170_s1 }
   0x5   :  { %p82_p2 = pnand %p80_p1, %p77_p0 }
   0x7   :  { %85 = shalt.err (!%p82_p2)
}
   0x8   :  { %s86_s18 = scalar_lea.vmem %s18_s10, 256  ;;  %p91_p4 = scmp.lt.s32.totalorder %s18_s10, %s18_s10 }
   0x9   :  { %p87_p3 = scmp.ne.s32.totalorder %s18_s10, %s86_s18  ;;  %p92_p5 = scmp.lt.s32.totalorder %s86_s18, %s86_s18 }
   0xb   :  { %p93_p6 = por %p92_p5, %p91_p4 }
   0xd   :  { %p94_p7 = pnand %p93_p6, %p87_p3 }
   0xf   :  { %97 = shalt.err (!%p94_p7)
}
  0x10   :  { %20 = dma.hbm_to_vmem [thread:$0]  %s170_s1, 256, %s18_s10, [#allocation3]  }
  0x11   :  { %120 = dma.done.wait [#allocation3], 256  }
  0x12   :  { %121 = vsyncadd [#allocation3], 4294967040  ;;  %v125_v0 = vmov 0   ;;  %v24_v1 = vld [vmem:[%s169_s0] sm:$0xff]  ;;  %v26_v4 = vld [vmem:[#allocation2 + $0x8] sm:$0xff]  ;;  %s126_s0 = smov [#allocation5]  }
  0x13   :  { %67 = vset.pattern.permute.xlu0 %v125_v0  ;;  %vm29_vm0 = vcmp.eq.s32.totalorder %v24_v1, 1  ;;  %v25_v3 = vld [vmem:[#allocation2] sm:$0xff]  ;;  %v31_v6 = vsub.f32 0.0, %v26_v4  ;;  %v28_v15 = vmax.f32 %v26_v4, 0.0  ;;  %s55_s1 = sshll.u32 %s126_s0, 4  ;;  %s56_s1 = int_to_ptr.vmem [resolvable:$true] %s55_s1 }
  0x14   :  { %v40_v2 = vsel %vm29_vm0, 1, %v125_v0  ;;  %v30_v5 = vsub.f32 0.0, %v25_v3  ;;  %v27_v14 = vmax.f32 %v25_v3, 0.0  ;;  %s98_s23 = scalar_lea.vmem %s56_s1, 256  ;;  %p103_p9 = scmp.lt.s32.totalorder %s56_s1, %s56_s1 }
  0x15   :  { %42 = vperm.xlu0 %67, %v40_v2   ;;  %v34_v8 = vmul.f32 1.442695, %v31_v6  ;;  %p99_p8 = scmp.ne.s32.totalorder %s56_s1, %s98_s23  ;;  %p104_p10 = scmp.lt.s32.totalorder %s98_s23, %s98_s23 }
  0x16   :  { %v32_v7 = vmul.f32 1.442695, %v30_v5 }
  0x17   :  { %p105_p11 = por %p104_p10, %p103_p9 }
  0x18   :  { %68 = vpow2.f32 %v32_v7 }
  0x19   :  { %70 = vpow2.f32 %v34_v8  ;;  %p106_p12 = pnand %p105_p11, %p99_p8 }
  0x22   :  { %v69_v9 = vpop.eup %68 }
  0x23   :  { %v71_v10 = vpop.eup %70  ;;  %v36_v11 = vadd.f32 1.0, %v69_v9 }
  0x24   :  { %v37_v12 = vadd.f32 1.0, %v71_v10 }
  0x25   :  { %72 = vrcp.f32 %v36_v11 }
  0x26   :  { %74 = vrcp.f32 %v37_v12 }
  0x2f   :  { %v73_v13 = vpop.eup %72 }
  0x30   :  { %v75_v16 = vpop.eup %74 }
  0x94   :  { %v43_v17 = vpop.permute.xlu0 %42 }
  0x95   :  { %vm44_vm1 = vcmp.eq.s32.totalorder %v43_v17, 1 }
  0x96   :  { %v45_v18 = vsel %vm44_vm1, %v73_v13, %v27_v14  ;;  %v46_v19 = vsel %vm44_vm1, %v75_v16, %v28_v15 }
  0x97   :  { %47 = vst [vmem:[#allocation5] sm:$0xff] %v45_v18  ;;  %48 = vst [vmem:[#allocation5 + $0x8] sm:$0xff] %v46_v19 }
  0x98   :  { %109 = shalt.err (!%p106_p12)
}
  0x99   :  { %s110_s26 = scalar_lea.hbm %s171_s2, 256 }
  0x9a   :  { %p111_p13 = scmp.ne.s32.totalorder %s171_s2, %s110_s26  ;;  %p114_p0 = scmp.lt.u32.totalorder %s110_s26, %s171_s2 }
  0x9c   :  { %p116_p1 = pnand %p114_p0, %p111_p13 }
  0x9e   :  { %119 = shalt.err (!%p116_p1)
}
  0x9f   :  { %58 = dma.vmem_to_hbm [thread:$0]  %s56_s1, 256, %s171_s2, [#allocation4]  }
  0xa0   :  { %122 = dma.done.wait [#allocation4], 256  }
  0xa1   :  { %123 = vsyncadd [#allocation4], 4294967040 }
  0xa2   :  { %62 = vsyncpa [#allocation3], 1 }
  0xa3   :  { %63 = vsyncpa [#allocation4], 1 }

</bundles_post_ra>
